<compile_context>
chip_gen: v7x
topology: tpu7x:2x2x1
jax: 0.10.0
libtpu: 0.0.40
codegen_flags: <defaults>
</compile_context>

<pallas_src>
import functools

import jax
import jax.numpy as jnp
from jax.experimental import pallas as pl
from jax.experimental.pallas import tpu as pltpu


def _round_up(x, m):
    return ((x + m - 1) // m) * m


def _res_sine_kernel(x_ref, w1_ref, b1_ref, w2_ref, b2_ref, o_ref, *, weight_2):
    # omega_0 and weight_1 are already folded into w1/b1/w2/b2 by the wrapper,
    # so the only per-element VPU work left is sin() and the residual epilogue.
    x = x_ref[...]
    xm = x.astype(w1_ref.dtype)

    h1 = jnp.dot(xm, w1_ref[...], preferred_element_type=jnp.float32) + b1_ref[...]
    s1 = jnp.sin(h1)

    h2 = jnp.dot(s1.astype(w2_ref.dtype), w2_ref[...],
                 preferred_element_type=jnp.float32) + b2_ref[...]
    s2 = jnp.sin(h2)

    o_ref[...] = (weight_2 * (x.astype(jnp.float32) + s2)).astype(o_ref.dtype)


def residual_sine_layer(x, w1, b1, w2, b2, *, omega_0=30.0,
                        ave_first=False, ave_second=False,
                        tile_m=256, use_bf16_matmul=False):
    """x: [B, F] f32. w1/w2: [F, F] PyTorch-layout (out, in). b1/b2: [F]."""
    B, F = x.shape
    weight_1 = 0.5 if ave_first else 1.0
    weight_2 = 0.5 if ave_second else 1.0
    omega_0 = float(omega_0)

    # --- Fold scalars into weights / biases (one-time, reused for all tiles). ---
    mm_dtype = jnp.bfloat16 if use_bf16_matmul else jnp.float32
    w1_f = ((omega_0 * weight_1) * w1.T).astype(mm_dtype)   # [F, F], in -> out
    w2_f = (omega_0 * w2.T).astype(mm_dtype)                # [F, F], in -> out
    b1_f = (omega_0 * b1).astype(jnp.float32).reshape(1, F)
    b2_f = (omega_0 * b2).astype(jnp.float32).reshape(1, F)

    # --- Lane-dense feature dim (multiple of 128); batch padded to the M tile. ---
    Fp = _round_up(max(F, 128), 128)
    tile_m_eff = _round_up(min(tile_m, _round_up(B, 8)), 8)
    Bp = _round_up(B, tile_m_eff)

    if Fp != F:
        w1_f = jnp.pad(w1_f, ((0, Fp - F), (0, Fp - F)))
        w2_f = jnp.pad(w2_f, ((0, Fp - F), (0, Fp - F)))
        b1_f = jnp.pad(b1_f, ((0, 0), (0, Fp - F)))
        b2_f = jnp.pad(b2_f, ((0, 0), (0, Fp - F)))
    x_p = x
    if (Bp != B) or (Fp != F):
        x_p = jnp.pad(x, ((0, Bp - B), (0, Fp - F)))

    # --- VMEM budget: double-buffered x/out tiles + resident folded weights. ---
    wbytes = 2 if use_bf16_matmul else 4
    needed = (2 * 2 * Fp * Fp * wbytes          # W1', W2' (double-buffered)
              + 2 * 2 * tile_m_eff * Fp * 4     # x tile + out tile (double-buffered)
              + 2 * 2 * Fp * 4)                 # biases
    # TODO(synk): for F >~ 2K on v7x (64 MiB VMEM/TC) single-buffer or N/K-tile
    # the weights instead of only raising the scoped limit.
    vmem_limit = int(min(max(2 * needed, 32 << 20), 100 << 20))

    grid = (Bp // tile_m_eff,)
    kernel = functools.partial(_res_sine_kernel, weight_2=float(weight_2))

    out_p = pl.pallas_call(
        kernel,
        out_shape=jax.ShapeDtypeStruct((Bp, Fp), x.dtype),
        grid_spec=pltpu.PrefetchScalarGridSpec(
            num_scalar_prefetch=0,
            grid=grid,
            in_specs=[
                pl.BlockSpec((tile_m_eff, Fp), lambda i: (i, 0)),  # x tile
                pl.BlockSpec((Fp, Fp), lambda i: (0, 0)),          # folded W1^T
                pl.BlockSpec((1, Fp), lambda i: (0, 0)),           # folded b1
                pl.BlockSpec((Fp, Fp), lambda i: (0, 0)),          # folded W2^T
                pl.BlockSpec((1, Fp), lambda i: (0, 0)),           # folded b2
            ],
            out_specs=pl.BlockSpec((tile_m_eff, Fp), lambda i: (i, 0)),
        ),
        compiler_params=pltpu.CompilerParams(
            dimension_semantics=("parallel",),
            vmem_limit_bytes=vmem_limit),
    )(x_p, w1_f, b1_f, w2_f, b2_f)

    return out_p[:B, :F]


def _reference(x, w1, b1, w2, b2, *, omega_0, weight_1, weight_2):
    s1 = jnp.sin(omega_0 * ((weight_1 * x) @ w1.T + b1))
    s2 = jnp.sin(omega_0 * (s1 @ w2.T + b2))
    return weight_2 * (x + s2)


if __name__ == "__main__":
    key = jax.random.PRNGKey(0)
    k_x, k_w1, k_b1, k_w2, k_b2 = jax.random.split(key, 5)

    batch, features = 16, 32
    omega_0 = 30.0
    ave_first, ave_second = False, True

    # Deterministic init mirroring the module's __init__:
    #   weights ~ U(-sqrt(6/F)/omega_0, +sqrt(6/F)/omega_0)
    #   biases keep PyTorch nn.Linear default: U(-1/sqrt(F), +1/sqrt(F))
    w_bound = jnp.sqrt(6.0 / features) / omega_0
    b_bound = 1.0 / jnp.sqrt(features)
    w1 = jax.random.uniform(k_w1, (features, features), jnp.float32,
                            -w_bound, w_bound)
    w2 = jax.random.uniform(k_w2, (features, features), jnp.float32,
                            -w_bound, w_bound)
    b1 = jax.random.uniform(k_b1, (features,), jnp.float32, -b_bound, b_bound)
    b2 = jax.random.uniform(k_b2, (features,), jnp.float32, -b_bound, b_bound)

    x = jax.random.uniform(k_x, (batch, features), jnp.float32, -1.0, 1.0)

    out = residual_sine_layer(x, w1, b1, w2, b2, omega_0=omega_0,
                              ave_first=ave_first, ave_second=ave_second)
    out = jax.block_until_ready(out)

    ref = _reference(x, w1, b1, w2, b2, omega_0=omega_0,
                     weight_1=0.5 if ave_first else 1.0,
                     weight_2=0.5 if ave_second else 1.0)
    assert out.shape == (batch, features)
    assert jnp.allclose(out, ref, atol=1e-4, rtol=1e-4), "mismatch vs reference"

    print("KERNEL_OK")
</pallas_src>

<mosaic_0001>
module attributes {stable_mosaic.version = 11 : i64} {
  func.func @_res_sine_kernel(%arg0: i32, %arg1: memref<16x128xf32, #tpu.memory_space<vmem>>, %arg2: memref<128x128xf32, #tpu.memory_space<vmem>>, %arg3: memref<1x128xf32, #tpu.memory_space<vmem>>, %arg4: memref<128x128xf32, #tpu.memory_space<vmem>>, %arg5: memref<1x128xf32, #tpu.memory_space<vmem>>, %arg6: memref<16x128xf32, #tpu.memory_space<vmem>>) attributes {dimension_semantics = [#tpu.dimension_semantics<parallel>], iteration_bounds = array<i64: 1>, scalar_prefetch = 0 : i64, scratch_operands = 0 : i64, tpu.core_type = #tpu.core_type<tc>, window_params = [{transform_indices = @transform_0, window_bounds = array<i64: 16, 128>}, {pipeline_mode = #tpu.pipeline_mode<synchronous>, transform_indices = @transform_1, window_bounds = array<i64: 128, 128>}, {pipeline_mode = #tpu.pipeline_mode<synchronous>, transform_indices = @transform_2, window_bounds = array<i64: 1, 128>}, {pipeline_mode = #tpu.pipeline_mode<synchronous>, transform_indices = @transform_3, window_bounds = array<i64: 128, 128>}, {pipeline_mode = #tpu.pipeline_mode<synchronous>, transform_indices = @transform_4, window_bounds = array<i64: 1, 128>}, {transform_indices = @transform_5, window_bounds = array<i64: 16, 128>}]} {
    %c0 = arith.constant 0 : index
    %c0_0 = arith.constant 0 : index
    %0 = vector.load %arg1[%c0, %c0_0] : memref<16x128xf32, #tpu.memory_space<vmem>>, vector<16x128xf32>
    %c0_1 = arith.constant 0 : index
    %c0_2 = arith.constant 0 : index
    %1 = vector.load %arg2[%c0_1, %c0_2] : memref<128x128xf32, #tpu.memory_space<vmem>>, vector<128x128xf32>
    %cst = arith.constant dense<0.000000e+00> : vector<16x128xf32>
    %2 = tpu.matmul %0, %1, %cst {dimension_numbers = #tpu.dot_dimension_numbers<[1], [0], [0], [1], [0, 0, 1, 1], [], []>} : vector<16x128xf32>, vector<128x128xf32>, vector<16x128xf32> -> vector<16x128xf32>
    %c0_3 = arith.constant 0 : index
    %c0_4 = arith.constant 0 : index
    %3 = vector.load %arg3[%c0_3, %c0_4] : memref<1x128xf32, #tpu.memory_space<vmem>>, vector<1x128xf32>
    %4 = vector.broadcast %3 : vector<1x128xf32> to vector<16x128xf32>
    %5 = arith.addf %2, %4 : vector<16x128xf32>
    %6 = math.sin %5 : vector<16x128xf32>
    %c0_5 = arith.constant 0 : index
    %c0_6 = arith.constant 0 : index
    %7 = vector.load %arg4[%c0_5, %c0_6] : memref<128x128xf32, #tpu.memory_space<vmem>>, vector<128x128xf32>
    %cst_7 = arith.constant dense<0.000000e+00> : vector<16x128xf32>
    %8 = tpu.matmul %6, %7, %cst_7 {dimension_numbers = #tpu.dot_dimension_numbers<[1], [0], [0], [1], [0, 0, 1, 1], [], []>} : vector<16x128xf32>, vector<128x128xf32>, vector<16x128xf32> -> vector<16x128xf32>
    %c0_8 = arith.constant 0 : index
    %c0_9 = arith.constant 0 : index
    %9 = vector.load %arg5[%c0_8, %c0_9] : memref<1x128xf32, #tpu.memory_space<vmem>>, vector<1x128xf32>
    %10 = vector.broadcast %9 : vector<1x128xf32> to vector<16x128xf32>
    %11 = arith.addf %8, %10 : vector<16x128xf32>
    %12 = math.sin %11 : vector<16x128xf32>
    %13 = arith.addf %0, %12 : vector<16x128xf32>
    %cst_10 = arith.constant 5.000000e-01 : f32
    %14 = vector.broadcast %cst_10 : f32 to vector<16x128xf32>
    %15 = arith.mulf %14, %13 : vector<16x128xf32>
    %c0_11 = arith.constant 0 : index
    %c0_12 = arith.constant 0 : index
    %16 = vector.load %arg6[%c0_11, %c0_12] : memref<16x128xf32, #tpu.memory_space<vmem>>, vector<16x128xf32>
    tpu.vector_store %arg6[%c0_11, %c0_12], %15 {strides = array<i32>} : memref<16x128xf32, #tpu.memory_space<vmem>>, vector<16x128xf32>,
    return
  }
  func.func @transform_0(%arg0: i32) -> (i32, i32) {
    %c0_i32 = arith.constant 0 : i32
    %c0_i32_0 = arith.constant 0 : i32
    return %arg0, %c0_i32 : i32, i32
  }
  func.func @transform_1(%arg0: i32) -> (i32, i32) {
    %c0_i32 = arith.constant 0 : i32
    %c0_i32_0 = arith.constant 0 : i32
    %c0_i32_1 = arith.constant 0 : i32
    return %c0_i32, %c0_i32_0 : i32, i32
  }
  func.func @transform_2(%arg0: i32) -> (i32, i32) {
    %c0_i32 = arith.constant 0 : i32
    %c0_i32_0 = arith.constant 0 : i32
    %c0_i32_1 = arith.constant 0 : i32
    return %c0_i32, %c0_i32_0 : i32, i32
  }
  func.func @transform_3(%arg0: i32) -> (i32, i32) {
    %c0_i32 = arith.constant 0 : i32
    %c0_i32_0 = arith.constant 0 : i32
    %c0_i32_1 = arith.constant 0 : i32
    return %c0_i32, %c0_i32_0 : i32, i32
  }
  func.func @transform_4(%arg0: i32) -> (i32, i32) {
    %c0_i32 = arith.constant 0 : i32
    %c0_i32_0 = arith.constant 0 : i32
    %c0_i32_1 = arith.constant 0 : i32
    return %c0_i32, %c0_i32_0 : i32, i32
  }
  func.func @transform_5(%arg0: i32) -> (i32, i32) {
    %c0_i32 = arith.constant 0 : i32
    %c0_i32_0 = arith.constant 0 : i32
    return %arg0, %c0_i32 : i32, i32
  }
}

</mosaic_0001>

<bundles_post_ra>
// kernel: tpu_custom_call.1
= control target key start
LH: loop header
LB: loop body
LE: loop exit
PB: predicated region body
PF: predicated region fallthrough
CT: control target
= control target key end

     0   :  { %10 = vsyncpa [#allocation3], 0  ;;  %s1329_s0 = inlined_call_operand.hbm [shape: f32[16,128], index: 0, kind: input, shape index: {}]   ;;  %s1330_s1 = inlined_call_operand.hbm [shape: f32[128,128], index: 1, kind: input, shape index: {}]   ;;  %s1331_s2 = inlined_call_operand.vmem [shape: f32[1,128], index: 2, kind: input, shape index: {}]   ;;  %s1332_s3 = inlined_call_operand.hbm [shape: f32[128,128], index: 3, kind: input, shape index: {}]   ;;  %s1333_s4 = inlined_call_operand.vmem [shape: f32[1,128], index: 4, kind: input, shape index: {}]   ;;  %s1334_s5 = inlined_call_operand.hbm [shape: f32[16,128], index: 5, kind: output, shape index: {}]  }
   0x1   :  { %11 = vsyncpa [#allocation6], 0 }
   0x2   :  { %12 = vsyncpa [#allocation4], 0  ;;  %s1026_s18 = smov [#allocation5]   ;;  %s1027_s20 = smov [#allocation2]  }
   0x3   :  { %s30_s19 = sshll.u32 %s1026_s18, 4  ;;  %s18_s21 = sshll.u32 %s1027_s20, 4  ;;  %s31_s19 = int_to_ptr.vmem [resolvable:$true] %s30_s19  ;;  %s1068_s21 = int_to_ptr.vmem [resolvable:$true] %s18_s21 }
   0x4   :  { %s932_s24 = scalar_lea.hbm %s1330_s1, 2048 }
   0x5   :  { %p933_p0 = scmp.ne.s32.totalorder %s1330_s1, %s932_s24  ;;  %p936_p1 = scmp.lt.u32.totalorder %s932_s24, %s1330_s1 }
   0x7   :  { %p938_p2 = pnand %p936_p1, %p933_p0 }
   0x9   :  { %941 = shalt.err (!%p938_p2)
}
   0xa   :  { %s942_s29 = scalar_lea.vmem %s31_s19, 2048  ;;  %p947_p4 = scmp.lt.s32.totalorder %s31_s19, %s31_s19 }
   0xb   :  { %p943_p3 = scmp.ne.s32.totalorder %s31_s19, %s942_s29  ;;  %p948_p5 = scmp.lt.s32.totalorder %s942_s29, %s942_s29 }
   0xd   :  { %p949_p6 = por %p948_p5, %p947_p4 }
   0xf   :  { %p950_p7 = pnand %p949_p6, %p943_p3 }
  0x11   :  { %953 = shalt.err (!%p950_p7)
}
  0x12   :  { %s1028_s30 = smov 128   ;;  %s1029_s6 = smov 8  }
  0x13   :  { %36 = dma.hbm_to_vmem [thread:$0]  %s1330_s1, 2048, %s31_s19, [#allocation6], %s1028_s30, %s1028_s30, %s1029_s6  }
  0x14   :  { %s954_s11 = scalar_lea.hbm %s1329_s0, 256 }
  0x15   :  { %p955_p8 = scmp.ne.s32.totalorder %s1329_s0, %s954_s11  ;;  %p958_p9 = scmp.lt.u32.totalorder %s954_s11, %s1329_s0 }
  0x17   :  { %p960_p10 = pnand %p958_p9, %p955_p8 }
  0x19   :  { %963 = shalt.err (!%p960_p10)
}
  0x1a   :  { %s964_s16 = scalar_lea.vmem %s1068_s21, 256  ;;  %p969_p12 = scmp.lt.s32.totalorder %s1068_s21, %s1068_s21 }
  0x1b   :  { %p965_p11 = scmp.ne.s32.totalorder %s1068_s21, %s964_s16  ;;  %p970_p13 = scmp.lt.s32.totalorder %s964_s16, %s964_s16 }
  0x1d   :  { %p971_p0 = por %p970_p13, %p969_p12 }
  0x1f   :  { %p972_p1 = pnand %p971_p0, %p965_p11 }
  0x21   :  { %975 = shalt.err (!%p972_p1)
}
  0x22   :  { %24 = dma.hbm_to_vmem [thread:$0]  %s1329_s0, 256, %s1068_s21, [#allocation3], %s1028_s30, %s1028_s30, %s1029_s6  }
  0x23   :  { %s1030_s18 = smov [#allocation7]   ;;  %s976_s23 = scalar_lea.hbm %s1332_s3, 2048 }
  0x24   :  { %s44_s19 = sshll.u32 %s1030_s18, 4  ;;  %p977_p2 = scmp.ne.s32.totalorder %s1332_s3, %s976_s23  ;;  %s45_s19 = int_to_ptr.vmem [resolvable:$true] %s44_s19 }
  0x25   :  { %p980_p3 = scmp.lt.u32.totalorder %s976_s23, %s1332_s3 }
  0x27   :  { %p982_p4 = pnand %p980_p3, %p977_p2 }
  0x29   :  { %985 = shalt.err (!%p982_p4)
}
  0x2a   :  { %s986_s28 = scalar_lea.vmem %s45_s19, 2048  ;;  %p991_p6 = scmp.lt.s32.totalorder %s45_s19, %s45_s19 }
  0x2b   :  { %p987_p5 = scmp.ne.s32.totalorder %s45_s19, %s986_s28  ;;  %p992_p7 = scmp.lt.s32.totalorder %s986_s28, %s986_s28 }
  0x2d   :  { %p993_p8 = por %p992_p7, %p991_p6 }
  0x2f   :  { %p994_p9 = pnand %p993_p8, %p987_p5 }
  0x31   :  { %997 = shalt.err (!%p994_p9)
}
  0x32   :  { %50 = dma.hbm_to_vmem [thread:$0]  %s1332_s3, 2048, %s45_s19, [#allocation6], %s1028_s30, %s1028_s30, %s1029_s6  }
  0x33   :  { %1020 = dma.done.wait [#allocation3], 256  }
  0x34   :  { %1021 = vsyncadd [#allocation3], 4294967040 }
  0x35   :  { %1022 = dma.done.wait [#allocation6], 4096  }
  0x36   :  { %1023 = vsyncadd [#allocation6], 4294963200  ;;  %v64_v0 = vld [vmem:[#allocation5] sm:$0xff]  ;;  %v65_v1 = vld [vmem:[#allocation5 + $0x8] sm:$0xff] }
  0x37   :  { %v66_v2 = vld [vmem:[#allocation5 + $0x10] sm:$0xff]  ;;  %v824_v3 = vpack.c.bf16 %v65_v1, %v64_v0  ;;  %v67_v4 = vld [vmem:[#allocation5 + $0x18] sm:$0xff]  ;;  %v68_v6 = vld [vmem:[#allocation5 + $0x20] sm:$0xff] }
  0x38   :  { %v828_v5 = vpack.c.bf16 %v67_v4, %v66_v2  ;;  %v69_v7 = vld [vmem:[#allocation5 + $0x28] sm:$0xff]  ;;  %v1120_v9 = vld [vmem:[#allocation2] sm:$0xff]  ;;  %v71_v11 = vld [vmem:[#allocation5 + $0x38] sm:$0xff] }
  0x39   :  { %825 = vmatprep.subr.bf16.mxu0 %v824_v3  ;;  %v832_v8 = vpack.c.bf16 %v69_v7, %v68_v6  ;;  %v70_v10 = vld [vmem:[#allocation5 + $0x30] sm:$0xff]  ;;  %786 = vmatprep.mubr.f32.mxu0 %v1120_v9  ;;  %v72_v13 = vld [vmem:[#allocation5 + $0x40] sm:$0xff]  ;;  %v73_v14 = vld [vmem:[#allocation5 + $0x48] sm:$0xff] }
  0x3a   :  { %827 = vmatpush3.bf16.msra.mxu0 %v824_v3  ;;  %v836_v12 = vpack.c.bf16 %v71_v11, %v70_v10  ;;  %v840_v15 = vpack.c.bf16 %v73_v14, %v72_v13  ;;  %v74_v16 = vld [vmem:[#allocation5 + $0x50] sm:$0xff]  ;;  %v75_v17 = vld [vmem:[#allocation5 + $0x58] sm:$0xff]  ;;  %v76_v19 = vld [vmem:[#allocation5 + $0x60] sm:$0xff]  ;;  %v1032_v14 = vmov 2475754826  }
  0x3b   :  { %829 = vmatprep.subr.bf16.mxu0 %v828_v5  ;;  %v844_v18 = vpack.c.bf16 %v75_v17, %v74_v16  ;;  %v77_v20 = vld [vmem:[#allocation5 + $0x68] sm:$0xff]  ;;  %v78_v22 = vld [vmem:[#allocation5 + $0x70] sm:$0xff]  ;;  %v79_v23 = vld [vmem:[#allocation5 + $0x78] sm:$0xff]  ;;  %v1033_v17 = vmov 2131351028  }
  0x3c   :  { %v848_v21 = vpack.c.bf16 %v77_v20, %v76_v19  ;;  %v852_v24 = vpack.c.bf16 %v79_v23, %v78_v22  ;;  %v1123_v25 = vld [vmem:[#allocation2 + $0x8] sm:$0xff]  ;;  %v370_v26 = vld [vmem:[#allocation7] sm:$0xff]  ;;  %v371_v27 = vld [vmem:[#allocation7 + $0x8] sm:$0xff]  ;;  %v1034_v19 = vmov 2102212464  }
  0x3d   :  { %v856_v28 = vpack.c.bf16 %v371_v27, %v370_v26  ;;  %v372_v29 = vld [vmem:[#allocation7 + $0x10] sm:$0xff]  ;;  %v373_v30 = vld [vmem:[#allocation7 + $0x18] sm:$0xff]  ;;  %v374_v32 = vld [vmem:[#allocation7 + $0x20] sm:$0xff] }
  0x3e   :  { %831 = vmatpush3.bf16.msra.mxu0 %v828_v5  ;;  %v860_v31 = vpack.c.bf16 %v373_v30, %v372_v29  ;;  %v375_v33 = vld [vmem:[#allocation7 + $0x28] sm:$0xff]  ;;  %v376_v34 = vld [vmem:[#allocation7 + $0x30] sm:$0xff]  ;;  %v377_v36 = vld [vmem:[#allocation7 + $0x38] sm:$0xff]  ;;  %v1036_v29 = vmov 1326507024  }
  0x3f   :  { %833 = vmatprep.subr.bf16.mxu0 %v832_v8  ;;  %857 = vmatprep.subr.bf16.mxu1 %v856_v28  ;;  %v864_v35 = vpack.c.bf16 %v375_v33, %v374_v32  ;;  %v868_v37 = vpack.c.bf16 %v377_v36, %v376_v34  ;;  %v378_v38 = vld [vmem:[#allocation7 + $0x40] sm:$0xff]  ;;  %v379_v39 = vld [vmem:[#allocation7 + $0x48] sm:$0xff]  ;;  %v380_v41 = vld [vmem:[#allocation7 + $0x50] sm:$0xff] }
  0x40   :  { %859 = vmatpush3.bf16.msra.mxu1 %v856_v28  ;;  %v872_v40 = vpack.c.bf16 %v379_v39, %v378_v38  ;;  %v381_v42 = vld [vmem:[#allocation7 + $0x58] sm:$0xff]  ;;  %v382_v44 = vld [vmem:[#allocation7 + $0x60] sm:$0xff]  ;;  %v383_v45 = vld [vmem:[#allocation7 + $0x68] sm:$0xff] }
  0x41   :  { %861 = vmatprep.subr.bf16.mxu1 %v860_v31  ;;  %v876_v43 = vpack.c.bf16 %v381_v42, %v380_v41  ;;  %v880_v46 = vpack.c.bf16 %v383_v45, %v382_v44  ;;  %v384_v47 = vld [vmem:[#allocation7 + $0x70] sm:$0xff]  ;;  %v385_v48 = vld [vmem:[#allocation7 + $0x78] sm:$0xff] }
  0x42   :  { %835 = vmatpush3.bf16.msra.mxu0 %v832_v8  ;;  %v884_v49 = vpack.c.bf16 %v385_v48, %v384_v47  ;;  %v700_v50 = vld [vmem:[%s1331_s2] ss:$0 sm:$0xff] }
  0x43   :  { %837 = vmatprep.subr.bf16.mxu0 %v836_v12 }
  0x44   :  { %863 = vmatpush3.bf16.msra.mxu1 %v860_v31 }
  0x45   :  { %865 = vmatprep.subr.bf16.mxu1 %v864_v35 }
  0x46   :  { %839 = vmatpush3.bf16.msra.mxu0 %v836_v12  ;;  %v1031_v12 = vmov 683565275  }
  0x47   :  { %841 = vmatprep.subr.bf16.mxu0 %v840_v15 }
  0x48   :  { %867 = vmatpush3.bf16.msra.mxu1 %v864_v35 }
  0x49   :  { %869 = vmatprep.subr.bf16.mxu1 %v868_v37 }
  0x4a   :  { %843 = vmatpush3.bf16.msra.mxu0 %v840_v15 }
  0x4b   :  { %845 = vmatprep.subr.bf16.mxu0 %v844_v18 }
  0x4c   :  { %871 = vmatpush3.bf16.msra.mxu1 %v868_v37 }
  0x4d   :  { %873 = vmatprep.subr.bf16.mxu1 %v872_v40 }
  0x4e   :  { %847 = vmatpush3.bf16.msra.mxu0 %v844_v18 }
  0x4f   :  { %849 = vmatprep.subr.bf16.mxu0 %v848_v21 }
  0x50   :  { %875 = vmatpush3.bf16.msra.mxu1 %v872_v40 }
  0x51   :  { %877 = vmatprep.subr.bf16.mxu1 %v876_v43 }
  0x52   :  { %851 = vmatpush3.bf16.msra.mxu0 %v848_v21  ;;  %v1035_v21 = vmov 920167782  }
  0x53   :  { %853 = vmatprep.subr.bf16.mxu0 %v852_v24 }
  0x54   :  { %879 = vmatpush3.bf16.msra.mxu1 %v876_v43 }
  0x55   :  { %881 = vmatprep.subr.bf16.mxu1 %v880_v46 }
  0x56   :  { %855 = vmatpush3.bf16.msra.mxu0 %v852_v24 }
  0x58   :  { %883 = vmatpush3.bf16.msra.mxu1 %v880_v46 }
  0x59   :  { %787 = vmatmul.mubr.f32.vlgmr.msra.gmra.mrb[0].mxu0 %v1123_v25  ;;  %885 = vmatprep.subr.bf16.mxu1 %v884_v49 }
  0x5c   :  { %887 = vmatpush3.bf16.msra.mxu1 %v884_v49 }
 0x12c   :  { %v788_v51 = vpop.f32.mrb[0].mxu0 }
 0x12d   :  { %v1129_v52 = vadd.f32 %v788_v51, %v700_v50  ;;  %v153_v53 = vpop.f32.mrb[1].mxu0 }
 0x12e   :  { %v1131_v54 = vadd.f32 %v700_v50, %v153_v53 }
 0x12f   :  { %v266_v55 = vand.u32 2147483647, %v1129_v52  ;;  %v269_v56 = vand.u32 2139095040, %v1129_v52  ;;  %vm268_vm14 = vcmp.lt.s32.totalorder %v1129_v52, 0 }
 0x130   :  { %v165_v57 = vand.u32 2139095040, %v1131_v54  ;;  %v162_v2 = vand.u32 2147483647, %v1131_v54 }
 0x131   :  { %v270_v58 = vshrl.u32 %v269_v56, 23  ;;  %v273_v59 = vand.u32 8388607, %v266_v55  ;;  %vm267_vm15 = vcmp.le.f32.partialorder %v266_v55, 0.7853982 }
 0x132   :  { %v166_v60 = vshrl.u32 %v165_v57, 23  ;;  %v1145_v10 = vand.u32 8388607, %v162_v2 }
 0x133   :  { %v705_v61 = vadd.s32 4294967169, %v270_v58  ;;  %v274_v0 = vor.u32 8388608, %v273_v59 }
 0x134   :  { %v701_v62 = vadd.s32 4294967169, %v166_v60 }
 0x135   :  { %v276_v63 = vadd.s32 1, %v705_v61  ;;  %v1139_v7 = vshll.u32 %v274_v0, 8 }
 0x136   :  { %v172_v1 = vadd.s32 1, %v701_v62 }
 0x137   :  { %vm277_vm0 = vcmp.gt.s32.totalorder %v276_v63, 0 }
 0x138   :  { %v278_v3 = vsel %vm277_vm0, %v276_v63, 0  ;;  %vm173_vm1 = vcmp.gt.s32.totalorder %v172_v1, 0  ;;  %v170_v63 = vor.u32 8388608, %v1145_v10  ;;  %vm164_vm0 = vcmp.lt.s32.totalorder %v1131_v54, 0 }
 0x139   :  { %v279_v4 = vshrl.u32 %v278_v3, 5  ;;  %v280_v5 = vand.u32 31, %v278_v3  ;;  %v174_v6 = vsel %vm173_vm1, %v172_v1, 0  ;;  %vm163_vm1 = vcmp.le.f32.partialorder %v162_v2, 0.7853982 }
 0x13a   :  { %v1141_v8 = vshrl.u32 %v174_v6, 5  ;;  %v176_v16 = vand.u32 31, %v174_v6 }
 0x13b   :  { %v281_v11 = vsub.s32 32, %v280_v5  ;;  %v283_v13 = vshll.u32 %v1031_v12, %v280_v5  ;;  %v286_v15 = vshll.u32 %v1032_v14, %v280_v5  ;;  %v289_v18 = vshll.u32 %v1033_v17, %v280_v5 }
 0x13c   :  { %v292_v20 = vshll.u32 %v1034_v19, %v280_v5  ;;  %v295_v22 = vshll.u32 %v1035_v21, %v280_v5  ;;  %vm298_vm2 = vcmp.lt.s32.totalorder %v279_v4, 1  ;;  %vm299_vm3 = vcmp.lt.s32.totalorder %v279_v4, 2 }
 0x13d   :  { %v284_v23 = vshrl.u32 %v1032_v14, %v281_v11  ;;  %v287_v24 = vshrl.u32 %v1033_v17, %v281_v11  ;;  %v290_v26 = vshrl.u32 %v1034_v19, %v281_v11  ;;  %v282_v27 = vshrl.u32 %v1031_v12, %v281_v11 }
 0x13e   :  { %v293_v28 = vshrl.u32 %v1035_v21, %v281_v11  ;;  %v296_v30 = vshrl.u32 %v1036_v29, %v281_v11  ;;  %vm300_vm4 = vcmp.lt.s32.totalorder %v279_v4, 3  ;;  %v177_v34 = vsub.s32 32, %v176_v16 }
 0x13f   :  { %v285_v31 = vor.u32 %v284_v23, %v283_v13  ;;  %v288_v32 = vor.u32 %v287_v24, %v286_v15  ;;  %v291_v33 = vor.u32 %v290_v26, %v289_v18  ;;  %vm301_vm5 = vcmp.lt.s32.totalorder %v279_v4, 4 }
 0x140   :  { %v294_v35 = vor.u32 %v293_v28, %v292_v20  ;;  %v297_v36 = vor.u32 %v296_v30, %v295_v22  ;;  %v188_v37 = vshll.u32 %v1034_v19, %v176_v16  ;;  %v189_v45 = vshrl.u32 %v1035_v21, %v177_v34 }
 0x141   :  { %v302_v38 = vsel %vm298_vm2, %v282_v27, %v285_v31  ;;  %v303_v39 = vsel %vm301_vm5, %v291_v33, 2102212464  ;;  %v306_v40 = vsel %vm298_vm2, %v285_v31, %v288_v32  ;;  %v310_v41 = vsel %vm298_vm2, %v288_v32, %v291_v33 }
 0x142   :  { %v304_v42 = vsel %vm300_vm4, %v288_v32, %v303_v39  ;;  %v307_v43 = vsel %vm301_vm5, %v294_v35, 920167782  ;;  %v311_v44 = vsel %vm301_vm5, %v297_v36, 1326507024  ;;  %v192_v49 = vshrl.u32 %v1036_v29, %v177_v34 }
 0x143   :  { %v305_v46 = vsel %vm299_vm3, %v302_v38, %v304_v42  ;;  %v308_v47 = vsel %vm300_vm4, %v291_v33, %v307_v43  ;;  %v312_v48 = vsel %vm300_vm4, %v294_v35, %v311_v44  ;;  %v190_v53 = vor.u32 %v189_v45, %v188_v37 }
 0x144   :  { %v309_v50 = vsel %vm299_vm3, %v306_v40, %v308_v47  ;;  %v313_v51 = vsel %vm299_vm3, %v310_v41, %v312_v48  ;;  %v191_v56 = vshll.u32 %v1035_v21, %v176_v16  ;;  %v321_v61 = vmul.u32 %v1139_v7, %v305_v46 }
 0x145   :  { %v1172_v57 = vmul.u32.u64.low %v1139_v7, %v313_v51  ;;  %v1173_v58 = vmul.u32.u64.high %v1139_v7, %v313_v51, %v1172_v57  ;;  %v1176_v59 = vmul.u32.u64.low %v1139_v7, %v309_v50  ;;  %v1177_v60 = vmul.u32.u64.high %v1139_v7, %v309_v50, %v1176_v59 }
 0x146   :  { %v193_v62 = vor.u32 %v192_v49, %v191_v56  ;;  %vm197_vm6 = vcmp.lt.s32.totalorder %v1141_v8, 4  ;;  %v179_v0 = vshll.u32 %v1031_v12, %v176_v16  ;;  %v180_v1 = vshrl.u32 %v1032_v14, %v177_v34 }
 0x147   :  { %v183_v3 = vshrl.u32 %v1033_v17, %v177_v34  ;;  %v182_v5 = vshll.u32 %v1032_v14, %v176_v16  ;;  %v185_v6 = vshll.u32 %v1033_v17, %v176_v16  ;;  %v186_v7 = vshrl.u32 %v1034_v19, %v177_v34 }
 0x148   :  { %v207_v4 = vsel %vm197_vm6, %v193_v62, 1326507024  ;;  %vm323_vm7 = vc.u32 %v1173_v58, %v1176_v59  ;;  %v324_v10 = vadd.s32 1, %v1177_v60  ;;  %v203_v11 = vsel %vm197_vm6, %v190_v53, 920167782 }
 0x149   :  { %v181_v13 = vor.u32 %v180_v1, %v179_v0  ;;  %v178_v15 = vshrl.u32 %v1031_v12, %v177_v34  ;;  %v184_v18 = vor.u32 %v183_v3, %v182_v5  ;;  %v187_v20 = vor.u32 %v186_v7, %v185_v6 }
 0x14a   :  { %vm196_vm8 = vcmp.lt.s32.totalorder %v1141_v8, 3  ;;  %v325_v22 = vsel %vm323_vm7, %v324_v10, %v1177_v60  ;;  %vm194_vm9 = vcmp.lt.s32.totalorder %v1141_v8, 1  ;;  %vm195_vm10 = vcmp.lt.s32.totalorder %v1141_v8, 2 }
 0x14b   :  { %v208_v16 = vsel %vm196_vm8, %v190_v53, %v207_v4  ;;  %v326_v23 = vadd.s32 %v325_v22, %v321_v61  ;;  %v199_v24 = vsel %vm197_vm6, %v187_v20, 2102212464  ;;  %v202_v26 = vsel %vm194_vm9, %v181_v13, %v184_v18 }
 0x14c   :  { %v204_v27 = vsel %vm196_vm8, %v187_v20, %v203_v11  ;;  %v206_v30 = vsel %vm194_vm9, %v184_v18, %v187_v20  ;;  %v210_v31 = vshll.u32 %v170_v63, 8  ;;  %v198_v33 = vsel %vm194_vm9, %v178_v15, %v181_v13 }
 0x14d   :  { %v205_v28 = vsel %vm195_vm10, %v202_v26, %v204_v27  ;;  %v327_v32 = vadd.s32 536870912, %v326_v23  ;;  %v200_v34 = vsel %vm196_vm8, %v184_v18, %v199_v24  ;;  %v209_v35 = vsel %vm195_vm10, %v206_v30, %v208_v16 }
 0x14e   :  { %v1205_v36 = vmul.u32.u64.low %v210_v31, %v209_v35  ;;  %v1206_v37 = vmul.u32.u64.high %v210_v31, %v209_v35, %v1205_v36  ;;  %v1208_v38 = vmul.u32.u64.low %v210_v31, %v205_v28  ;;  %v1209_v39 = vmul.u32.u64.high %v210_v31, %v205_v28, %v1208_v38 }
 0x14f   :  { %v328_v40 = vshrl.u32 %v327_v32, 30  ;;  %v201_v41 = vsel %vm195_vm10, %v198_v33, %v200_v34  ;;  %v322_v61 = vadd.s32 %v1176_v59, %v1173_v58  ;;  %vm358_vm5 = vweird.f32 %v1129_v52 }
 0x150   :  { %vm219_vm11 = vc.u32 %v1206_v37, %v1208_v38  ;;  %v220_v43 = vadd.s32 1, %v1209_v39  ;;  %v217_v45 = vmul.u32 %v210_v31, %v201_v41  ;;  %v218_v58 = vadd.s32 %v1208_v38, %v1206_v37 }
 0x151   :  { %v329_v42 = vshll.u32 %v328_v40, 30  ;;  %v352_v22 = vsub.s32 4, %v328_v40  ;;  %vm254_vm9 = vweird.f32 %v1131_v54 }
 0x152   :  { %v221_v46 = vsel %vm219_vm11, %v220_v43, %v1209_v39 }
 0x153   :  { %v330_v44 = vsub.s32 %v326_v23, %v329_v42  ;;  %v222_v48 = vadd.s32 %v221_v46, %v217_v45  ;;  %v353_v33 = vsel %vm268_vm14, %v352_v22, %v328_v40 }
 0x154   :  { %v355_v36 = vsel %vm267_vm15, 0, %v353_v33 }
 0x155   :  { %v332_v47 = vsub.s32 0, %v330_v44  ;;  %v223_v50 = vadd.s32 536870912, %v222_v48  ;;  %v359_v42 = vadd.s32 3, %v355_v36 }
 0x157   :  { %v706_v49 = vmin.u32 %v332_v47, %v330_v44  ;;  %v224_v53 = vshrl.u32 %v223_v50, 30  ;;  %v360_v40 = vand.u32 3, %v359_v42 }
 0x159   :  { %v334_v51 = vclz %v706_v49  ;;  %v225_v57 = vshll.u32 %v224_v53, 30  ;;  %v248_v41 = vsub.s32 4, %v224_v53  ;;  %vm365_vm2 = vcmp.eq.s32.totalorder %v360_v40, 2 }
 0x15a   :  { %vm362_vm3 = vcmp.eq.s32.totalorder %v360_v40, 0  ;;  %vm361_vm4 = vcmp.lt.s32.totalorder %v360_v40, 2 }
 0x15b   :  { %v707_v56 = vadd.s32 4294967294, %v334_v51  ;;  %v226_v8 = vsub.s32 %v222_v48, %v225_v57 }
 0x15d   :  { %vm708_vm12 = vcmp.lt.s32.totalorder %v707_v56, 0  ;;  %v228_v0 = vsub.s32 0, %v226_v8 }
 0x15e   :  { %v337_v60 = vsel %vm708_vm12, 0, %v707_v56 }
 0x15f   :  { %v338_v62 = vsub.s32 32, %v337_v60  ;;  %v342_v63 = vsub.s32 4294967266, %v337_v60  ;;  %v339_v1 = vshll.u32 %v330_v44, %v337_v60  ;;  %v702_v5 = vmin.u32 %v228_v0, %v226_v8 }
 0x160   :  { %v249_v44 = vsel %vm164_vm0, %v248_v41, %v224_v53 }
 0x161   :  { %v340_v3 = vshrl.u32 %v322_v61, %v338_v62  ;;  %v343_v4 = vadd.s32 127, %v342_v63  ;;  %v230_v10 = vclz %v702_v5  ;;  %v251_v48 = vsel %vm163_vm1, 0, %v249_v44 }
 0x162   :  { %v255_v56 = vadd.s32 3, %v251_v48 }
 0x163   :  { %v341_v6 = vor.u32 %v340_v3, %v339_v1  ;;  %v344_v7 = vshll.u32 %v343_v4, 23  ;;  %v703_v13 = vadd.s32 4294967294, %v230_v10 }
 0x165   :  { %v345_v11 = vor.u32 4788187, %v344_v7  ;;  %v348_v18 = vcvt.s32.f32 %v341_v6  ;;  %vm704_vm13 = vcmp.lt.s32.totalorder %v703_v13, 0 }
 0x166   :  { %v233_v20 = vsel %vm704_vm13, 0, %v703_v13 }
 0x167   :  { %v346_v15 = vand.u32 2147483647, %v345_v11  ;;  %v234_v59 = vsub.s32 32, %v233_v20  ;;  %v238_v23 = vsub.s32 4294967266, %v233_v20  ;;  %v235_v26 = vshll.u32 %v226_v8, %v233_v20 }
 0x168   :  { %v256_v8 = vand.u32 3, %v255_v56 }
 0x169   :  { %v349_v16 = vmul.f32 %v348_v18, %v346_v15  ;;  %v236_v27 = vshrl.u32 %v218_v58, %v234_v59  ;;  %v239_v28 = vadd.s32 127, %v238_v23 }
 0x16a   :  { %vm261_vm6 = vcmp.eq.s32.totalorder %v256_v8, 2  ;;  %vm258_vm7 = vcmp.eq.s32.totalorder %v256_v8, 0  ;;  %vm257_vm8 = vcmp.lt.s32.totalorder %v256_v8, 2 }
 0x16b   :  { %v350_v24 = vxor.u32 2147483648, %v349_v16  ;;  %v237_v31 = vor.u32 %v236_v27, %v235_v26  ;;  %v240_v32 = vshll.u32 %v239_v28, 23 }
 0x16d   :  { %v351_v30 = vsel %vm268_vm14, %v350_v24, %v349_v16  ;;  %v241_v35 = vor.u32 4788187, %v240_v32  ;;  %v244_v38 = vcvt.s32.f32 %v237_v31 }
 0x16e   :  { %v354_v34 = vsel %vm267_vm15, %v1129_v52, %v351_v30  ;;  %v709_v52 = vld [vmem:[%s1333_s4] ss:$0 sm:$0xff]  ;;  %s1037_s4 = smov [#allocation8]  }
 0x16f   :  { %916 = vcosq.f32 %v354_v34  ;;  %v242_v37 = vand.u32 2147483647, %v241_v35  ;;  %s687_s8 = sshll.u32 %s1037_s4, 4  ;;  %s688_s8 = int_to_ptr.vmem [resolvable:$true] %s687_s8 }
 0x170   :  { %918 = vsinq.f32 %v354_v34  ;;  %s998_s9 = scalar_lea.vmem %s688_s8, 256  ;;  %p1003_p11 = scmp.lt.s32.totalorder %s688_s8, %s688_s8 }
 0x171   :  { %v245_v39 = vmul.f32 %v244_v38, %v242_v37  ;;  %p999_p10 = scmp.ne.s32.totalorder %s688_s8, %s998_s9  ;;  %p1004_p12 = scmp.lt.s32.totalorder %s998_s9, %s998_s9 }
 0x173   :  { %v246_v43 = vxor.u32 2147483648, %v245_v39  ;;  %p1005_p13 = por %p1004_p12, %p1003_p11 }
 0x175   :  { %v247_v55 = vsel %vm164_vm0, %v246_v43, %v245_v39  ;;  %p1006_p0 = pnand %p1005_p13, %p999_p10 }
 0x176   :  { %v250_v45 = vsel %vm163_vm1, %v1131_v54, %v247_v55 }
 0x177   :  { %920 = vcosq.f32 %v250_v45 }
 0x178   :  { %922 = vsinq.f32 %v250_v45 }
 0x179   :  { %v917_v46 = vpop.eup %916 }
 0x17a   :  { %v919_v47 = vpop.eup %918  ;;  %v366_v49 = vxor.u32 2147483648, %v917_v46 }
 0x17b   :  { %v363_v50 = vxor.u32 2147483648, %v919_v47 }
 0x17c   :  { %v367_v51 = vsel %vm365_vm2, %v366_v49, %v919_v47 }
 0x17d   :  { %v364_v57 = vsel %vm362_vm3, %v917_v46, %v363_v50 }
 0x17e   :  { %v368_v2 = vsel %vm361_vm4, %v364_v57, %v367_v51 }
 0x17f   :  { %v369_v53 = vsel %vm358_vm5, nan, %v368_v2 }
 0x181   :  { %v921_v60 = vpop.eup %920 }
 0x182   :  { %v923_v61 = vpop.eup %922  ;;  %v262_v62 = vxor.u32 2147483648, %v921_v60 }
 0x183   :  { %v259_v63 = vxor.u32 2147483648, %v923_v61 }
 0x184   :  { %v263_v0 = vsel %vm261_vm6, %v262_v62, %v923_v61 }
 0x185   :  { %v260_v1 = vsel %vm258_vm7, %v921_v60, %v259_v63 }
 0x186   :  { %v264_v3 = vsel %vm257_vm8, %v260_v1, %v263_v0 }
 0x187   :  { %v265_v4 = vsel %vm254_vm9, nan, %v264_v3 }
 0x188   :  { %821 = vmatprep.mubr.f32.mxu1 %v265_v4 }
 0x189   :  { %822 = vmatmul.mubr.f32.vlgmr.msra.gmra.mrb[0].mxu1 %v369_v53 }
 0x25c   :  { %v823_v5 = vpop.f32.mrb[0].mxu1 }
 0x25d   :  { %v1231_v6 = vadd.f32 %v823_v5, %v709_v52  ;;  %v459_v7 = vpop.f32.mrb[1].mxu1 }
 0x25e   :  { %v1233_v10 = vadd.f32 %v709_v52, %v459_v7 }
 0x25f   :  { %v572_v11 = vand.u32 2147483647, %v1231_v6  ;;  %v575_v13 = vand.u32 2139095040, %v1231_v6  ;;  %vm574_vm8 = vcmp.lt.s32.totalorder %v1231_v6, 0 }
 0x260   :  { %v471_v54 = vand.u32 2139095040, %v1233_v10  ;;  %v468_v20 = vand.u32 2147483647, %v1233_v10 }
 0x261   :  { %v576_v15 = vshrl.u32 %v575_v13, 23  ;;  %v579_v18 = vand.u32 8388607, %v572_v11  ;;  %vm573_vm9 = vcmp.le.f32.partialorder %v572_v11, 0.7853982 }
 0x262   :  { %v472_v22 = vshrl.u32 %v471_v54, 23  ;;  %v475_v24 = vand.u32 8388607, %v468_v20 }
 0x263   :  { %v714_v16 = vadd.s32 4294967169, %v576_v15  ;;  %v580_v23 = vor.u32 8388608, %v579_v18 }
 0x264   :  { %v710_v58 = vadd.s32 4294967169, %v472_v22  ;;  %v476_v33 = vor.u32 8388608, %v475_v24 }
 0x265   :  { %v582_v59 = vadd.s32 1, %v714_v16  ;;  %v1243_v32 = vshll.u32 %v580_v23, 8 }
 0x266   :  { %v478_v26 = vadd.s32 1, %v710_v58 }
 0x267   :  { %vm583_vm10 = vcmp.gt.s32.totalorder %v582_v59, 0 }
 0x268   :  { %v584_v27 = vsel %vm583_vm10, %v582_v59, 0  ;;  %vm479_vm11 = vcmp.gt.s32.totalorder %v478_v26, 0  ;;  %vm470_vm10 = vcmp.lt.s32.totalorder %v1233_v10, 0 }
 0x269   :  { %v585_v28 = vshrl.u32 %v584_v27, 5  ;;  %v586_v30 = vand.u32 31, %v584_v27  ;;  %v480_v31 = vsel %vm479_vm11, %v478_v26, 0  ;;  %v516_v27 = vshll.u32 %v476_v33, 8 }
 0x26a   :  { %v1246_v36 = vshrl.u32 %v480_v31, 5  ;;  %v482_v37 = vand.u32 31, %v480_v31  ;;  %vm469_vm11 = vcmp.le.f32.partialorder %v468_v20, 0.7853982 }
 0x26b   :  { %v587_v34 = vsub.s32 32, %v586_v30  ;;  %v589_v35 = vshll.u32 %v1031_v12, %v586_v30  ;;  %v592_v38 = vshll.u32 %v1032_v14, %v586_v30  ;;  %v595_v39 = vshll.u32 %v1033_v17, %v586_v30 }
 0x26c   :  { %v598_v41 = vshll.u32 %v1034_v19, %v586_v30  ;;  %v601_v42 = vshll.u32 %v1035_v21, %v586_v30  ;;  %vm604_vm12 = vcmp.lt.s32.totalorder %v585_v28, 1  ;;  %vm605_vm13 = vcmp.lt.s32.totalorder %v585_v28, 2 }
 0x26d   :  { %v590_v43 = vshrl.u32 %v1032_v14, %v587_v34  ;;  %v593_v55 = vshrl.u32 %v1033_v17, %v587_v34  ;;  %v596_v44 = vshrl.u32 %v1034_v19, %v587_v34  ;;  %v588_v40 = vshrl.u32 %v1031_v12, %v587_v34 }
 0x26e   :  { %v599_v45 = vshrl.u32 %v1035_v21, %v587_v34  ;;  %v602_v46 = vshrl.u32 %v1036_v29, %v587_v34  ;;  %v483_v50 = vsub.s32 32, %v482_v37  ;;  %vm606_vm14 = vcmp.lt.s32.totalorder %v585_v28, 3 }
 0x26f   :  { %v591_v47 = vor.u32 %v590_v43, %v589_v35  ;;  %v594_v48 = vor.u32 %v593_v55, %v592_v38  ;;  %v597_v49 = vor.u32 %v596_v44, %v595_v39  ;;  %vm607_vm15 = vcmp.lt.s32.totalorder %v585_v28, 4 }
 0x270   :  { %v600_v51 = vor.u32 %v599_v45, %v598_v41  ;;  %v603_v56 = vor.u32 %v602_v46, %v601_v42  ;;  %v485_v63 = vshll.u32 %v1031_v12, %v482_v37  ;;  %v486_v3 = vshrl.u32 %v1032_v14, %v483_v50 }
 0x271   :  { %v608_v57 = vsel %vm604_vm12, %v588_v40, %v591_v47  ;;  %v609_v2 = vsel %vm607_vm15, %v597_v49, 2102212464  ;;  %v612_v53 = vsel %vm604_vm12, %v591_v47, %v594_v48  ;;  %v616_v8 = vsel %vm604_vm12, %v594_v48, %v597_v49 }
 0x272   :  { %v610_v60 = vsel %vm606_vm14, %v594_v48, %v609_v2  ;;  %v613_v61 = vsel %vm607_vm15, %v600_v51, 920167782  ;;  %v617_v62 = vsel %vm607_vm15, %v603_v56, 1326507024  ;;  %v488_v4 = vshll.u32 %v1032_v14, %v482_v37 }
 0x273   :  { %v614_v0 = vsel %vm606_vm14, %v597_v49, %v613_v61  ;;  %v618_v1 = vsel %vm606_vm14, %v600_v51, %v617_v62  ;;  %v611_v52 = vsel %vm605_vm13, %v608_v57, %v610_v60  ;;  %v489_v13 = vshrl.u32 %v1033_v17, %v483_v50 }
 0x274   :  { %v615_v5 = vsel %vm605_vm13, %v612_v53, %v614_v0  ;;  %v619_v7 = vsel %vm605_vm13, %v616_v8, %v618_v1  ;;  %v487_v16 = vor.u32 %v486_v3, %v485_v63  ;;  %v491_v14 = vshll.u32 %v1033_v17, %v482_v37 }
 0x275   :  { %v1269_v54 = vmul.u32.u64.low %v1243_v32, %v619_v7  ;;  %v1270_v15 = vmul.u32.u64.high %v1243_v32, %v619_v7, %v1269_v54  ;;  %v1273_v18 = vmul.u32.u64.low %v1243_v32, %v615_v5  ;;  %v1274_v22 = vmul.u32.u64.high %v1243_v32, %v615_v5, %v1273_v18 }
 0x276   :  { %v490_v58 = vor.u32 %v489_v13, %v488_v4  ;;  %v492_v59 = vshrl.u32 %v1034_v19, %v483_v50  ;;  %v494_v23 = vshll.u32 %v1034_v19, %v482_v37  ;;  %v495_v24 = vshrl.u32 %v1035_v21, %v483_v50 }
 0x277   :  { %v498_v26 = vshrl.u32 %v1036_v29, %v483_v50  ;;  %v627_v28 = vmul.u32 %v1243_v32, %v611_v52  ;;  %v484_v30 = vshrl.u32 %v1031_v12, %v483_v50  ;;  %v497_v34 = vshll.u32 %v1035_v21, %v482_v37 }
 0x278   :  { %v493_v31 = vor.u32 %v492_v59, %v491_v14  ;;  %vm629_vm0 = vc.u32 %v1270_v15, %v1273_v18  ;;  %v630_v17 = vadd.s32 1, %v1274_v22  ;;  %v496_v35 = vor.u32 %v495_v24, %v494_v23 }
 0x279   :  { %vm500_vm1 = vcmp.lt.s32.totalorder %v1246_v36, 1  ;;  %v499_v19 = vor.u32 %v498_v26, %v497_v34  ;;  %vm502_vm2 = vcmp.lt.s32.totalorder %v1246_v36, 3  ;;  %vm503_vm3 = vcmp.lt.s32.totalorder %v1246_v36, 4 }
 0x27a   :  { %v508_v29 = vsel %vm500_vm1, %v487_v16, %v490_v58  ;;  %v631_v32 = vsel %vm629_vm0, %v630_v17, %v1274_v22  ;;  %v505_v33 = vsel %vm503_vm3, %v493_v31, 2102212464  ;;  %v509_v12 = vsel %vm503_vm3, %v496_v35, 920167782 }
 0x27b   :  { %v512_v38 = vsel %vm500_vm1, %v490_v58, %v493_v31  ;;  %v632_v39 = vadd.s32 %v631_v32, %v627_v28  ;;  %vm501_vm4 = vcmp.lt.s32.totalorder %v1246_v36, 2  ;;  %v510_v21 = vsel %vm502_vm2, %v493_v31, %v509_v12 }
 0x27c   :  { %v513_v37 = vsel %vm503_vm3, %v499_v19, 1326507024  ;;  %v504_v41 = vsel %vm500_vm1, %v484_v30, %v487_v16  ;;  %v506_v42 = vsel %vm502_vm2, %v490_v58, %v505_v33  ;;  %v511_v43 = vsel %vm501_vm4, %v508_v29, %v510_v21 }
 0x27d   :  { %v514_v55 = vsel %vm502_vm2, %v496_v35, %v513_v37  ;;  %v633_v44 = vadd.s32 536870912, %v632_v39  ;;  %v1291_v45 = vmul.u32.u64.low %v516_v27, %v511_v43  ;;  %v1292_v46 = vmul.u32.u64.high %v516_v27, %v511_v43, %v1291_v45 }
 0x27e   :  { %v515_v40 = vsel %vm501_vm4, %v512_v38, %v514_v55  ;;  %v507_v50 = vsel %vm501_vm4, %v504_v41, %v506_v42  ;;  %v628_v5 = vadd.s32 %v1273_v18, %v1270_v15  ;;  %vm664_vm15 = vweird.f32 %v1231_v6 }
 0x27f   :  { %v1294_v47 = vmul.u32.u64.low %v516_v27, %v515_v40  ;;  %v1295_v48 = vmul.u32.u64.high %v516_v27, %v515_v40, %v1294_v47  ;;  %v634_v49 = vshrl.u32 %v633_v44, 30  ;;  %v526_v56 = vadd.s32 1, %v1292_v46 }
 0x280   :  { %v523_v36 = vmul.u32 %v516_v27, %v507_v50  ;;  %vm560_vm3 = vweird.f32 %v1233_v10 }
 0x281   :  { %v635_v51 = vshll.u32 %v634_v49, 30  ;;  %vm525_vm5 = vc.u32 %v1295_v48, %v1291_v45  ;;  %v524_v31 = vadd.s32 %v1291_v45, %v1295_v48  ;;  %v658_v18 = vsub.s32 4, %v634_v49 }
 0x282   :  { %v527_v2 = vsel %vm525_vm5, %v526_v56, %v1292_v46 }
 0x283   :  { %v636_v57 = vsub.s32 %v632_v39, %v635_v51  ;;  %v528_v53 = vadd.s32 %v527_v2, %v523_v36  ;;  %v659_v39 = vsel %vm574_vm8, %v658_v18, %v634_v49 }
 0x284   :  { %v661_v43 = vsel %vm573_vm9, 0, %v659_v39 }
 0x285   :  { %v638_v8 = vsub.s32 0, %v636_v57  ;;  %v529_v60 = vadd.s32 536870912, %v528_v53  ;;  %v665_v40 = vadd.s32 3, %v661_v43 }
 0x287   :  { %v715_v61 = vmin.u32 %v638_v8, %v636_v57  ;;  %v530_v62 = vshrl.u32 %v529_v60, 30  ;;  %v666_v48 = vand.u32 3, %v665_v40 }
 0x289   :  { %v640_v63 = vclz %v715_v61  ;;  %v531_v0 = vshll.u32 %v530_v62, 30  ;;  %v554_v44 = vsub.s32 4, %v530_v62  ;;  %vm671_vm12 = vcmp.eq.s32.totalorder %v666_v48, 2 }
 0x28a   :  { %vm668_vm13 = vcmp.eq.s32.totalorder %v666_v48, 0  ;;  %vm667_vm14 = vcmp.lt.s32.totalorder %v666_v48, 2 }
 0x28b   :  { %v716_v1 = vadd.s32 4294967294, %v640_v63  ;;  %v532_v3 = vsub.s32 %v528_v53, %v531_v0  ;;  %v555_v46 = vsel %vm470_vm10, %v554_v44, %v530_v62 }
 0x28c   :  { %v557_v50 = vsel %vm469_vm11, 0, %v555_v46 }
 0x28d   :  { %vm717_vm6 = vcmp.lt.s32.totalorder %v716_v1, 0  ;;  %v534_v52 = vsub.s32 0, %v532_v3 }
 0x28e   :  { %v643_v4 = vsel %vm717_vm6, 0, %v716_v1 }
 0x28f   :  { %v644_v7 = vsub.s32 32, %v643_v4  ;;  %v648_v13 = vsub.s32 4294967266, %v643_v4  ;;  %v711_v54 = vmin.u32 %v534_v52, %v532_v3  ;;  %v645_v22 = vshll.u32 %v636_v57, %v643_v4 }
 0x290   :  { %v561_v57 = vadd.s32 3, %v557_v50 }
 0x291   :  { %v646_v16 = vshrl.u32 %v628_v5, %v644_v7  ;;  %v649_v58 = vadd.s32 127, %v648_v13  ;;  %v536_v14 = vclz %v711_v54 }
 0x292   :  { %v562_v60 = vand.u32 3, %v561_v57 }
 0x293   :  { %v647_v59 = vor.u32 %v646_v16, %v645_v22  ;;  %v650_v23 = vshll.u32 %v649_v58, 23  ;;  %v712_v24 = vadd.s32 4294967294, %v536_v14 }
 0x294   :  { %vm567_vm0 = vcmp.eq.s32.totalorder %v562_v60, 2  ;;  %vm564_vm1 = vcmp.eq.s32.totalorder %v562_v60, 0  ;;  %vm563_vm2 = vcmp.lt.s32.totalorder %v562_v60, 2 }
 0x295   :  { %v651_v26 = vor.u32 4788187, %v650_v23  ;;  %vm713_vm7 = vcmp.lt.s32.totalorder %v712_v24, 0  ;;  %v654_v28 = vcvt.s32.f32 %v647_v59 }
 0x296   :  { %v539_v30 = vsel %vm713_vm7, 0, %v712_v24 }
 0x297   :  { %v652_v27 = vand.u32 2147483647, %v651_v26  ;;  %v540_v34 = vsub.s32 32, %v539_v30  ;;  %v544_v17 = vsub.s32 4294967266, %v539_v30  ;;  %v541_v35 = vshll.u32 %v532_v3, %v539_v30 }
 0x299   :  { %v655_v15 = vmul.f32 %v654_v28, %v652_v27  ;;  %v542_v19 = vshrl.u32 %v524_v31, %v540_v34  ;;  %v545_v29 = vadd.s32 127, %v544_v17 }
 0x29b   :  { %v656_v32 = vxor.u32 2147483648, %v655_v15  ;;  %v543_v33 = vor.u32 %v542_v19, %v541_v35  ;;  %v546_v12 = vshll.u32 %v545_v29, 23 }
 0x29d   :  { %v657_v38 = vsel %vm574_vm8, %v656_v32, %v655_v15  ;;  %v547_v37 = vor.u32 4788187, %v546_v12  ;;  %v550_v42 = vcvt.s32.f32 %v543_v33 }
 0x29e   :  { %v660_v21 = vsel %vm573_vm9, %v1231_v6, %v657_v38 }
 0x29f   :  { %924 = vcosq.f32 %v660_v21  ;;  %v548_v41 = vand.u32 2147483647, %v547_v37 }
 0x2a0   :  { %926 = vsinq.f32 %v660_v21 }
 0x2a1   :  { %v551_v55 = vmul.f32 %v550_v42, %v548_v41 }
 0x2a3   :  { %v552_v45 = vxor.u32 2147483648, %v551_v55 }
 0x2a5   :  { %v553_v11 = vsel %vm470_vm10, %v552_v45, %v551_v55 }
 0x2a6   :  { %v556_v47 = vsel %vm469_vm11, %v1233_v10, %v553_v11 }
 0x2a7   :  { %928 = vcosq.f32 %v556_v47 }
 0x2a8   :  { %930 = vsinq.f32 %v556_v47 }
 0x2a9   :  { %v925_v49 = vpop.eup %924 }
 0x2aa   :  { %v927_v51 = vpop.eup %926  ;;  %v672_v56 = vxor.u32 2147483648, %v925_v49 }
 0x2ab   :  { %v669_v36 = vxor.u32 2147483648, %v927_v51 }
 0x2ac   :  { %v673_v2 = vsel %vm671_vm12, %v672_v56, %v927_v51 }
 0x2ad   :  { %v670_v53 = vsel %vm668_vm13, %v925_v49, %v669_v36 }
 0x2ae   :  { %v674_v20 = vsel %vm667_vm14, %v670_v53, %v673_v2 }
 0x2af   :  { %v675_v8 = vsel %vm664_vm15, nan, %v674_v20 }
 0x2b0   :  { %v677_v61 = vadd.f32 %v675_v8, %v1123_v25 }
 0x2b1   :  { %v929_v62 = vpop.eup %928 }
 0x2b2   :  { %v679_v63 = vmul.f32 0.5, %v677_v61  ;;  %v931_v0 = vpop.eup %930  ;;  %v568_v1 = vxor.u32 2147483648, %v929_v62 }
 0x2b3   :  { %v565_v3 = vxor.u32 2147483648, %v931_v0 }
 0x2b4   :  { %681 = vst [vmem:[#allocation8 + $0x8] sm:$0xff] %v679_v63  ;;  %v569_v4 = vsel %vm567_vm0, %v568_v1, %v931_v0 }
 0x2b5   :  { %v566_v52 = vsel %vm564_vm1, %v929_v62, %v565_v3 }
 0x2b6   :  { %v570_v5 = vsel %vm563_vm2, %v566_v52, %v569_v4 }
 0x2b7   :  { %v571_v6 = vsel %vm560_vm3, nan, %v570_v5 }
 0x2b8   :  { %v676_v7 = vadd.f32 %v571_v6, %v1120_v9 }
 0x2ba   :  { %v678_v25 = vmul.f32 0.5, %v676_v7 }
 0x2bc   :  { %680 = vst [vmem:[#allocation8] sm:$0xff] %v678_v25 }
 0x2bd   :  { %1009 = shalt.err (!%p1006_p0)
}
 0x2be   :  { %s1010_s12 = scalar_lea.hbm %s1334_s5, 256 }
 0x2bf   :  { %p1011_p1 = scmp.ne.s32.totalorder %s1334_s5, %s1010_s12  ;;  %p1014_p2 = scmp.lt.u32.totalorder %s1010_s12, %s1334_s5 }
 0x2c1   :  { %p1016_p3 = pnand %p1014_p2, %p1011_p1 }
 0x2c3   :  { %1019 = shalt.err (!%p1016_p3)
}
 0x2c4   :  { %693 = dma.vmem_to_hbm [thread:$0]  %s688_s8, 256, %s1334_s5, [#allocation4], %s1028_s30, %s1028_s30, %s1029_s6  }
 0x2c5   :  { %1024 = dma.done.wait [#allocation4], 256  }
 0x2c6   :  { %1025 = vsyncadd [#allocation4], 4294967040 }
 0x2c7   :  { %697 = vsyncpa [#allocation3], 1 }
 0x2c8   :  { %698 = vsyncpa [#allocation6], 1 }
 0x2c9   :  { %699 = vsyncpa [#allocation4], 1 }

</bundles_post_ra>
